<compile_context>
chip_gen: v7x
topology: tpu7x:2x2x1
jax: 0.10.0
libtpu: 0.0.40
codegen_flags: <defaults>
</compile_context>

<pallas_src>
import jax
import jax.numpy as jnp
from jax.experimental import pallas as pl
from jax.experimental.pallas import tpu as pltpu


# --------------------------------------------------------------------------- #
# Fused decoder-step kernel                                                    #
# --------------------------------------------------------------------------- #
def _decoder_step_kernel(ids_ref, h_ref, c_ref, enc_ref, encp_ref, mask_ref,
                         emb_ref, attn_wh_ref, attn_b_ref, v_ref,
                         w_gates_ref, b_gates_ref, w_out_ref, b_out_ref,
                         logits_ref, h_out_ref, attn_out_ref):
    """Single fused decoder step. All refs are whole arrays resident in VMEM.

    ids_ref     (B, 1)  i32      token ids
    h_ref       (B, Hd) f32      previous decoder hidden state
    c_ref       (B, Hd) f32      previous decoder cell state
    enc_ref     (B, S, He) f32   encoder outputs (batch-first)
    encp_ref    (B, S, Hd) f32   hoisted enc_outputs @ W_e^T (attention, no bias)
    mask_ref    (B, S)  i32      1 = valid source position, 0 = padding
    emb_ref     (V, E)  f32      embedding table
    attn_wh_ref (Hd, Hd)         hidden-side attention weight (transposed)
    attn_b_ref  (1, Hd)          attention Linear bias
    v_ref       (1, 1, Hd)       attention score vector v
    w_gates_ref (E+He+Hd, 4Hd)   stacked [W_ih^T ; W_hh^T]
    b_gates_ref (1, 4Hd)         b_ih + b_hh
    w_out_ref   (Hd+He+E, V)     output Linear weight (transposed)
    b_out_ref   (1, V)           output Linear bias
    """
    B = ids_ref.shape[0]
    V = emb_ref.shape[0]
    Hd = h_ref.shape[1]

    # --- 1. embedding lookup (dropout == identity in eval mode) --------------
    # one-hot @ table keeps the lookup on the MXU and inside the fused kernel.
    # TODO(synk): for a large vocabulary, replace with a wrapper-side gather or
    # a DMA gather instead of the one-hot matmul.
    vocab_iota = jax.lax.broadcasted_iota(jnp.int32, (B, V), 1)
    onehot = (vocab_iota == ids_ref[...]).astype(jnp.float32)            # (B, V)
    embedded = jnp.dot(onehot, emb_ref[...],
                       preferred_element_type=jnp.float32)               # (B, E)

    # --- 2. attention scores --------------------------------------------------
    h_prev = h_ref[...]                                                  # (B, Hd)
    hid_part = (jnp.dot(h_prev, attn_wh_ref[...],
                        preferred_element_type=jnp.float32)
                + attn_b_ref[...])                                       # (B, Hd)
    energy = jnp.tanh(encp_ref[...] + hid_part[:, None, :])              # (B,S,Hd)
    score = jnp.sum(energy * v_ref[...], axis=-1)                        # (B, S)
    score = jnp.where(mask_ref[...] == 0, -1e10, score)

    # softmax over source positions
    m = jnp.max(score, axis=-1, keepdims=True)
    e = jnp.exp(score - m)
    attn = e / jnp.sum(e, axis=-1, keepdims=True)                        # (B, S)

    # --- 3. weighted context (bmm) --------------------------------------------
    weighted = jnp.einsum('bqs,bse->bqe', attn[:, None, :], enc_ref[...],
                          preferred_element_type=jnp.float32)[:, 0, :]   # (B, He)

    # --- 4. LSTM cell: one fused gates matmul ----------------------------------
    z = jnp.concatenate([embedded, weighted, h_prev], axis=1)            # (B, E+He+Hd)
    gates = (jnp.dot(z, w_gates_ref[...],
                     preferred_element_type=jnp.float32)
             + b_gates_ref[...])                                         # (B, 4Hd)
    i_g = jax.nn.sigmoid(gates[:, 0 * Hd:1 * Hd])
    f_g = jax.nn.sigmoid(gates[:, 1 * Hd:2 * Hd])
    g_g = jnp.tanh(gates[:, 2 * Hd:3 * Hd])
    o_g = jax.nn.sigmoid(gates[:, 3 * Hd:4 * Hd])
    c_new = f_g * c_ref[...] + i_g * g_g
    h_new = o_g * jnp.tanh(c_new)
    # (torch's `assert (output == hidden).all()` is trivially true: 1 layer,
    #  1 timestep -> output == h_new, so it is not re-checked here.)

    # --- 5. output projection ---------------------------------------------------
    feat = jnp.concatenate([h_new, weighted, embedded], axis=1)          # (B, Hd+He+E)
    logits = (jnp.dot(feat, w_out_ref[...],
                      preferred_element_type=jnp.float32)
              + b_out_ref[...])                                          # (B, V)

    logits_ref[...] = logits
    h_out_ref[...] = h_new
    attn_out_ref[...] = attn


# --------------------------------------------------------------------------- #
# Wrapper                                                                      #
# --------------------------------------------------------------------------- #
def decoder_forward(input_ids, hidden, cell, encoder_outputs, mask, params):
    """input_ids (B,) int; hidden/cell (B, Hd); encoder_outputs (S, B, He);
    mask (B, S).  Returns (logits (B, V), new_hidden (B, Hd), attention (B, S))."""
    S, B, He = encoder_outputs.shape
    Hd = hidden.shape[-1]
    V = params['embedding'].shape[0]

    # Layout plumbing + the hoisted, decode-step-invariant attention projection
    # (one big (S*B, He) x (He, Hd) matmul instead of per-position work).
    enc_bse = jnp.transpose(encoder_outputs, (1, 0, 2))                  # (B,S,He)
    enc_part = jnp.dot(enc_bse.reshape(B * S, He), params['attn_We_T'],
                       precision=jax.lax.Precision.HIGHEST,
                       preferred_element_type=jnp.float32).reshape(B, S, Hd)

    ids = input_ids.astype(jnp.int32).reshape(B, 1)
    mask_i = mask.astype(jnp.int32)

    args = (ids, hidden.astype(jnp.float32), cell.astype(jnp.float32),
            enc_bse.astype(jnp.float32), enc_part, mask_i,
            params['embedding'], params['attn_Wh_T'], params['attn_b'],
            params['v3'], params['w_gates'], params['b_gates'],
            params['out_W_T'], params['out_b'])

    vmem = pl.BlockSpec(memory_space=pltpu.MemorySpace.VMEM)
    out_shape = (jax.ShapeDtypeStruct((B, V), jnp.float32),
                 jax.ShapeDtypeStruct((B, Hd), jnp.float32),
                 jax.ShapeDtypeStruct((B, S), jnp.float32))

    return pl.pallas_call(
        _decoder_step_kernel,
        out_shape=out_shape,
        in_specs=[vmem] * len(args),
        out_specs=(vmem, vmem, vmem),
    )(*args)


# --------------------------------------------------------------------------- #
# Parameters (mirroring nn.Embedding / attention / nn.LSTM / nn.Linear shapes) #
# --------------------------------------------------------------------------- #
def init_params(key, output_dim, emb_dim, enc_hid_dim, dec_hid_dim):
    ks = jax.random.split(key, 10)

    def unif(k, shape, bound):
        return jax.random.uniform(k, shape, jnp.float32, -bound, bound)

    ba = (enc_hid_dim + dec_hid_dim) ** -0.5
    bl = dec_hid_dim ** -0.5
    bo = (enc_hid_dim + dec_hid_dim + emb_dim) ** -0.5
    return {
        'embedding': 0.5 * jax.random.normal(ks[0], (output_dim, emb_dim), jnp.float32),
        'attn_w': unif(ks[1], (dec_hid_dim, enc_hid_dim + dec_hid_dim), ba),
        'attn_b': unif(ks[2], (dec_hid_dim,), ba),
        'v': jax.random.uniform(ks[3], (dec_hid_dim,), jnp.float32),     # torch.rand
        'w_ih': unif(ks[4], (4 * dec_hid_dim, enc_hid_dim + emb_dim), bl),
        'w_hh': unif(ks[5], (4 * dec_hid_dim, dec_hid_dim), bl),
        'b_ih': unif(ks[6], (4 * dec_hid_dim,), bl),
        'b_hh': unif(ks[7], (4 * dec_hid_dim,), bl),
        'out_w': unif(ks[8], (output_dim, enc_hid_dim + dec_hid_dim + emb_dim), bo),
        'out_b': unif(ks[9], (output_dim,), bo),
    }


def pack_params(raw, dec_hid_dim):
    """Pre-transpose / pre-stack weights so the kernel only does dense matmuls."""
    Hd = dec_hid_dim
    w_attn = raw['attn_w']          # (Hd, Hd + He); cat order is (hidden, enc)
    return {
        'embedding': raw['embedding'],
        'attn_Wh_T': jnp.transpose(w_attn[:, :Hd]),                      # (Hd, Hd)
        'attn_We_T': jnp.transpose(w_attn[:, Hd:]),                      # (He, Hd)
        'attn_b': raw['attn_b'].reshape(1, -1),
        'v3': raw['v'].reshape(1, 1, -1),
        # rnn input is cat(embedded, weighted); z in-kernel is [emb|weighted|h]
        'w_gates': jnp.concatenate([jnp.transpose(raw['w_ih']),
                                    jnp.transpose(raw['w_hh'])], axis=0),
        'b_gates': (raw['b_ih'] + raw['b_hh']).reshape(1, -1),
        'out_W_T': jnp.transpose(raw['out_w']),                          # (Hd+He+E, V)
        'out_b': raw['out_b'].reshape(1, -1),
    }


# --------------------------------------------------------------------------- #
# Pure-JAX reference (mirrors the PyTorch forward, eval mode)                  #
# --------------------------------------------------------------------------- #
def decoder_ref(input_ids, hidden, cell, encoder_outputs, mask, raw):
    hp = jax.lax.Precision.HIGHEST
    S, B, He = encoder_outputs.shape
    Hd = hidden.shape[-1]
    embedded = raw['embedding'][input_ids]                               # (B, E)
    hid_rep = jnp.repeat(hidden[:, None, :], S, axis=1)                  # (B,S,Hd)
    enc_bse = jnp.transpose(encoder_outputs, (1, 0, 2))                  # (B,S,He)
    cat = jnp.concatenate([hid_rep, enc_bse], axis=-1)
    energy = jnp.tanh(jnp.einsum('bsk,dk->bsd', cat, raw['attn_w'], precision=hp)
                      + raw['attn_b'])
    score = jnp.einsum('bsd,d->bs', energy, raw['v'], precision=hp)
    score = jnp.where(mask == 0, -1e10, score)
    a = jax.nn.softmax(score, axis=1)
    weighted = jnp.einsum('bs,bse->be', a, enc_bse, precision=hp)        # (B, He)
    x = jnp.concatenate([embedded, weighted], axis=1)
    gates = (jnp.dot(x, raw['w_ih'].T, precision=hp)
             + jnp.dot(hidden, raw['w_hh'].T, precision=hp)
             + raw['b_ih'] + raw['b_hh'])
    i_g = jax.nn.sigmoid(gates[:, 0 * Hd:1 * Hd])
    f_g = jax.nn.sigmoid(gates[:, 1 * Hd:2 * Hd])
    g_g = jnp.tanh(gates[:, 2 * Hd:3 * Hd])
    o_g = jax.nn.sigmoid(gates[:, 3 * Hd:4 * Hd])
    c_new = f_g * cell + i_g * g_g
    h_new = o_g * jnp.tanh(c_new)
    feat = jnp.concatenate([h_new, weighted, embedded], axis=1)
    logits = jnp.dot(feat, raw['out_w'].T, precision=hp) + raw['out_b']
    return logits, h_new, a


# --------------------------------------------------------------------------- #
if __name__ == "__main__":
    OUTPUT_DIM, EMB_DIM, ENC_HID, DEC_HID = 50, 16, 32, 32
    B, S = 4, 8

    key = jax.random.PRNGKey(0)
    kp, k1, k2, k3, k4 = jax.random.split(key, 5)

    raw = init_params(kp, OUTPUT_DIM, EMB_DIM, ENC_HID, DEC_HID)
    params = pack_params(raw, DEC_HID)

    input_ids = jax.random.randint(k1, (B,), 0, OUTPUT_DIM, jnp.int32)
    hidden = 0.1 * jax.random.normal(k2, (B, DEC_HID), jnp.float32)
    cell = 0.1 * jax.random.normal(k3, (B, DEC_HID), jnp.float32)
    encoder_outputs = jax.random.normal(k4, (S, B, ENC_HID), jnp.float32)
    src_len = jnp.array([8, 7, 5, 3], jnp.int32)                 # valid source lengths
    mask = (jnp.arange(S)[None, :] < src_len[:, None]).astype(jnp.int32)   # (B, S)

    fwd = jax.jit(decoder_forward)
    logits, hid_new, attn_w = fwd(input_ids, hidden, cell, encoder_outputs, mask, params)
    jax.block_until_ready((logits, hid_new, attn_w))

    assert logits.shape == (B, OUTPUT_DIM)
    assert hid_new.shape == (B, DEC_HID)
    assert attn_w.shape == (B, S)

    # Correctness vs a pure-JAX mirror of the PyTorch forward.
    ref_logits, ref_hid, ref_a = decoder_ref(input_ids, hidden, cell,
                                             encoder_outputs, mask, raw)
    assert bool(jnp.allclose(logits, ref_logits, atol=5e-3, rtol=5e-3))
    assert bool(jnp.allclose(hid_new, ref_hid, atol=5e-3, rtol=5e-3))
    assert bool(jnp.allclose(attn_w, ref_a, atol=5e-3, rtol=5e-3))
    # Attention rows sum to one and masked positions get (numerically) zero weight.
    assert bool(jnp.all(jnp.abs(jnp.sum(attn_w, axis=1) - 1.0) < 1e-5))
    assert bool(jnp.all(jnp.where(mask == 0, attn_w, 0.0) < 1e-6))

    print("KERNEL_OK")
</pallas_src>

<mosaic_0001>
module attributes {stable_mosaic.version = 11 : i64} {
  func.func @_decoder_step_kernel(%arg0: memref<4x1xi32, #tpu.memory_space<vmem>>, %arg1: memref<4x32xf32, #tpu.memory_space<vmem>>, %arg2: memref<4x32xf32, #tpu.memory_space<vmem>>, %arg3: memref<4x8x32xf32, #tpu.memory_space<vmem>>, %arg4: memref<4x8x32xf32, #tpu.memory_space<vmem>>, %arg5: memref<4x8xi32, #tpu.memory_space<vmem>>, %arg6: memref<50x16xf32, #tpu.memory_space<vmem>>, %arg7: memref<32x32xf32, #tpu.memory_space<vmem>>, %arg8: memref<1x32xf32, #tpu.memory_space<vmem>>, %arg9: memref<1x1x32xf32, #tpu.memory_space<vmem>>, %arg10: memref<80x128xf32, #tpu.memory_space<vmem>>, %arg11: memref<1x128xf32, #tpu.memory_space<vmem>>, %arg12: memref<80x50xf32, #tpu.memory_space<vmem>>, %arg13: memref<1x50xf32, #tpu.memory_space<vmem>>, %arg14: memref<4x50xf32, #tpu.memory_space<vmem>>, %arg15: memref<4x32xf32, #tpu.memory_space<vmem>>, %arg16: memref<4x8xf32, #tpu.memory_space<vmem>>) attributes {dimension_semantics = [], scalar_prefetch = 0 : i64, scratch_operands = 0 : i64, tpu.core_type = #tpu.core_type<tc>} {
    %0 = tpu.iota {dimensions = array<i32: 1>} : vector<4x50xi32>
    %c0 = arith.constant 0 : index
    %c0_0 = arith.constant 0 : index
    %1 = vector.load %arg0[%c0, %c0_0] : memref<4x1xi32, #tpu.memory_space<vmem>>, vector<4x1xi32>
    %2 = vector.broadcast %1 : vector<4x1xi32> to vector<4x50xi32>
    %3 = arith.cmpi eq, %0, %2 : vector<4x50xi32>
    %4 = arith.extui %3 : vector<4x50xi1> to vector<4x50xi32>
    %5 = arith.sitofp %4 : vector<4x50xi32> to vector<4x50xf32>
    %c0_1 = arith.constant 0 : index
    %c0_2 = arith.constant 0 : index
    %6 = vector.load %arg6[%c0_1, %c0_2] : memref<50x16xf32, #tpu.memory_space<vmem>>, vector<50x16xf32>
    %cst = arith.constant dense<0.000000e+00> : vector<4x16xf32>
    %7 = tpu.matmul %5, %6, %cst {dimension_numbers = #tpu.dot_dimension_numbers<[1], [0], [0], [1], [0, 0, 1, 1], [], []>} : vector<4x50xf32>, vector<50x16xf32>, vector<4x16xf32> -> vector<4x16xf32>
    %c0_3 = arith.constant 0 : index
    %c0_4 = arith.constant 0 : index
    %8 = vector.load %arg1[%c0_3, %c0_4] : memref<4x32xf32, #tpu.memory_space<vmem>>, vector<4x32xf32>
    %c0_5 = arith.constant 0 : index
    %c0_6 = arith.constant 0 : index
    %9 = vector.load %arg7[%c0_5, %c0_6] : memref<32x32xf32, #tpu.memory_space<vmem>>, vector<32x32xf32>
    %cst_7 = arith.constant dense<0.000000e+00> : vector<4x32xf32>
    %10 = tpu.matmul %8, %9, %cst_7 {dimension_numbers = #tpu.dot_dimension_numbers<[1], [0], [0], [1], [0, 0, 1, 1], [], []>} : vector<4x32xf32>, vector<32x32xf32>, vector<4x32xf32> -> vector<4x32xf32>
    %c0_8 = arith.constant 0 : index
    %c0_9 = arith.constant 0 : index
    %11 = vector.load %arg8[%c0_8, %c0_9] : memref<1x32xf32, #tpu.memory_space<vmem>>, vector<1x32xf32>
    %12 = vector.broadcast %11 : vector<1x32xf32> to vector<4x32xf32>
    %13 = arith.addf %10, %12 : vector<4x32xf32>
    %c0_10 = arith.constant 0 : index
    %c0_11 = arith.constant 0 : index
    %c0_12 = arith.constant 0 : index
    %14 = vector.load %arg4[%c0_10, %c0_11, %c0_12] : memref<4x8x32xf32, #tpu.memory_space<vmem>>, vector<4x8x32xf32>
    %15 = vector.shape_cast %13 : vector<4x32xf32> to vector<4x1x32xf32>
    %16 = vector.broadcast %15 : vector<4x1x32xf32> to vector<4x8x32xf32>
    %17 = arith.addf %14, %16 : vector<4x8x32xf32>
    %18 = math.tanh %17 : vector<4x8x32xf32>
    %c0_13 = arith.constant 0 : index
    %c0_14 = arith.constant 0 : index
    %c0_15 = arith.constant 0 : index
    %19 = vector.load %arg9[%c0_13, %c0_14, %c0_15] : memref<1x1x32xf32, #tpu.memory_space<vmem>>, vector<1x1x32xf32>
    %20 = vector.broadcast %19 : vector<1x1x32xf32> to vector<4x8x32xf32>
    %21 = arith.mulf %18, %20 : vector<4x8x32xf32>
    %cst_16 = arith.constant dense<0.000000e+00> : vector<4x8xf32>
    %22 = vector.multi_reduction <add>, %21, %cst_16 [2] : vector<4x8x32xf32> to vector<4x8xf32>
    %c0_17 = arith.constant 0 : index
    %c0_18 = arith.constant 0 : index
    %23 = vector.load %arg5[%c0_17, %c0_18] : memref<4x8xi32, #tpu.memory_space<vmem>>, vector<4x8xi32>
    %c0_i32 = arith.constant 0 : i32
    %24 = vector.broadcast %c0_i32 : i32 to vector<4x8xi32>
    %25 = arith.cmpi eq, %23, %24 : vector<4x8xi32>
    %cst_19 = arith.constant -1.000000e+10 : f32
    %26 = vector.broadcast %cst_19 : f32 to vector<4x8xf32>
    %27 = arith.select %25, %26, %22 : vector<4x8xi1>, vector<4x8xf32>
    %cst_20 = arith.constant dense<0xFF800000> : vector<4xf32>
    %28 = vector.multi_reduction <maximumf>, %27, %cst_20 [1] : vector<4x8xf32> to vector<4xf32>
    %29 = vector.shape_cast %28 : vector<4xf32> to vector<4x1xf32>
    %30 = vector.broadcast %29 : vector<4x1xf32> to vector<4x8xf32>
    %31 = arith.subf %27, %30 : vector<4x8xf32>
    %32 = math.exp %31 : vector<4x8xf32>
    %cst_21 = arith.constant dense<0.000000e+00> : vector<4xf32>
    %33 = vector.multi_reduction <add>, %32, %cst_21 [1] : vector<4x8xf32> to vector<4xf32>
    %34 = vector.shape_cast %33 : vector<4xf32> to vector<4x1xf32>
    %35 = vector.broadcast %34 : vector<4x1xf32> to vector<4x8xf32>
    %36 = arith.divf %32, %35 : vector<4x8xf32>
    %37 = vector.shape_cast %36 : vector<4x8xf32> to vector<4x1x8xf32>
    %c0_22 = arith.constant 0 : index
    %c0_23 = arith.constant 0 : index
    %c0_24 = arith.constant 0 : index
    %38 = vector.load %arg3[%c0_22, %c0_23, %c0_24] : memref<4x8x32xf32, #tpu.memory_space<vmem>>, vector<4x8x32xf32>
    "tpu.trace_start"() <{level = 10 : i32, message = "bqs,bse->bqe"}> : () -> ()
    %cst_25 = arith.constant dense<0.000000e+00> : vector<4x1x32xf32>
    %39 = tpu.matmul %37, %38, %cst_25 {dimension_numbers = #tpu.dot_dimension_numbers<[2], [1], [1], [2], [0, 0, 0, 1, 1, 2], [0], [0]>} : vector<4x1x8xf32>, vector<4x8x32xf32>, vector<4x1x32xf32> -> vector<4x1x32xf32>
    "tpu.trace_stop"() : () -> ()
    %40 = vector.shape_cast %39 : vector<4x1x32xf32> to vector<4x32xf32>
    %41 = tpu.concatenate %7, %40, %8 in 1 : vector<4x16xf32>, vector<4x32xf32>, vector<4x32xf32> -> vector<4x80xf32>
    %c0_26 = arith.constant 0 : index
    %c0_27 = arith.constant 0 : index
    %42 = vector.load %arg10[%c0_26, %c0_27] : memref<80x128xf32, #tpu.memory_space<vmem>>, vector<80x128xf32>
    %cst_28 = arith.constant dense<0.000000e+00> : vector<4x128xf32>
    %43 = tpu.matmul %41, %42, %cst_28 {dimension_numbers = #tpu.dot_dimension_numbers<[1], [0], [0], [1], [0, 0, 1, 1], [], []>} : vector<4x80xf32>, vector<80x128xf32>, vector<4x128xf32> -> vector<4x128xf32>
    %c0_29 = arith.constant 0 : index
    %c0_30 = arith.constant 0 : index
    %44 = vector.load %arg11[%c0_29, %c0_30] : memref<1x128xf32, #tpu.memory_space<vmem>>, vector<1x128xf32>
    %45 = vector.broadcast %44 : vector<1x128xf32> to vector<4x128xf32>
    %46 = arith.addf %43, %45 : vector<4x128xf32>
    %47 = vector.extract_strided_slice %46 {offsets = [0, 0], sizes = [4, 32], strides = [1, 1]} : vector<4x128xf32> to vector<4x32xf32>
    %48 = arith.negf %47 : vector<4x32xf32>
    %49 = math.exp %48 : vector<4x32xf32>
    %cst_31 = arith.constant 1.000000e+00 : f32
    %50 = vector.broadcast %cst_31 : f32 to vector<4x32xf32>
    %51 = arith.addf %50, %49 : vector<4x32xf32>
    %52 = arith.divf %50, %51 : vector<4x32xf32>
    %53 = vector.extract_strided_slice %46 {offsets = [0, 32], sizes = [4, 32], strides = [1, 1]} : vector<4x128xf32> to vector<4x32xf32>
    %54 = arith.negf %53 : vector<4x32xf32>
    %55 = math.exp %54 : vector<4x32xf32>
    %cst_32 = arith.constant 1.000000e+00 : f32
    %56 = vector.broadcast %cst_32 : f32 to vector<4x32xf32>
    %57 = arith.addf %56, %55 : vector<4x32xf32>
    %58 = arith.divf %56, %57 : vector<4x32xf32>
    %59 = vector.extract_strided_slice %46 {offsets = [0, 64], sizes = [4, 32], strides = [1, 1]} : vector<4x128xf32> to vector<4x32xf32>
    %60 = math.tanh %59 : vector<4x32xf32>
    %61 = vector.extract_strided_slice %46 {offsets = [0, 96], sizes = [4, 32], strides = [1, 1]} : vector<4x128xf32> to vector<4x32xf32>
    %62 = arith.negf %61 : vector<4x32xf32>
    %63 = math.exp %62 : vector<4x32xf32>
    %cst_33 = arith.constant 1.000000e+00 : f32
    %64 = vector.broadcast %cst_33 : f32 to vector<4x32xf32>
    %65 = arith.addf %64, %63 : vector<4x32xf32>
    %66 = arith.divf %64, %65 : vector<4x32xf32>
    %c0_34 = arith.constant 0 : index
    %c0_35 = arith.constant 0 : index
    %67 = vector.load %arg2[%c0_34, %c0_35] : memref<4x32xf32, #tpu.memory_space<vmem>>, vector<4x32xf32>
    %68 = arith.mulf %58, %67 : vector<4x32xf32>
    %69 = arith.mulf %52, %60 : vector<4x32xf32>
    %70 = arith.addf %68, %69 : vector<4x32xf32>
    %71 = math.tanh %70 : vector<4x32xf32>
    %72 = arith.mulf %66, %71 : vector<4x32xf32>
    %73 = tpu.concatenate %72, %40, %7 in 1 : vector<4x32xf32>, vector<4x32xf32>, vector<4x16xf32> -> vector<4x80xf32>
    %c0_36 = arith.constant 0 : index
    %c0_37 = arith.constant 0 : index
    %74 = vector.load %arg12[%c0_36, %c0_37] : memref<80x50xf32, #tpu.memory_space<vmem>>, vector<80x50xf32>
    %cst_38 = arith.constant dense<0.000000e+00> : vector<4x50xf32>
    %75 = tpu.matmul %73, %74, %cst_38 {dimension_numbers = #tpu.dot_dimension_numbers<[1], [0], [0], [1], [0, 0, 1, 1], [], []>} : vector<4x80xf32>, vector<80x50xf32>, vector<4x50xf32> -> vector<4x50xf32>
    %c0_39 = arith.constant 0 : index
    %c0_40 = arith.constant 0 : index
    %76 = vector.load %arg13[%c0_39, %c0_40] : memref<1x50xf32, #tpu.memory_space<vmem>>, vector<1x50xf32>
    %77 = vector.broadcast %76 : vector<1x50xf32> to vector<4x50xf32>
    %78 = arith.addf %75, %77 : vector<4x50xf32>
    %c0_41 = arith.constant 0 : index
    %c0_42 = arith.constant 0 : index
    %79 = vector.load %arg14[%c0_41, %c0_42] : memref<4x50xf32, #tpu.memory_space<vmem>>, vector<4x50xf32>
    tpu.vector_store %arg14[%c0_41, %c0_42], %78 {strides = array<i32>} : memref<4x50xf32, #tpu.memory_space<vmem>>, vector<4x50xf32>,
    %c0_43 = arith.constant 0 : index
    %c0_44 = arith.constant 0 : index
    %80 = vector.load %arg15[%c0_43, %c0_44] : memref<4x32xf32, #tpu.memory_space<vmem>>, vector<4x32xf32>
    tpu.vector_store %arg15[%c0_43, %c0_44], %72 {strides = array<i32>} : memref<4x32xf32, #tpu.memory_space<vmem>>, vector<4x32xf32>,
    %c0_45 = arith.constant 0 : index
    %c0_46 = arith.constant 0 : index
    %81 = vector.load %arg16[%c0_45, %c0_46] : memref<4x8xf32, #tpu.memory_space<vmem>>, vector<4x8xf32>
    tpu.vector_store %arg16[%c0_45, %c0_46], %36 {strides = array<i32>} : memref<4x8xf32, #tpu.memory_space<vmem>>, vector<4x8xf32>,
    return
  }
}

</mosaic_0001>

<bundles_post_ra>
// kernel: decoder_forward.1
= control target key start
LH: loop header
LB: loop body
LE: loop exit
PB: predicated region body
PF: predicated region fallthrough
CT: control target
= control target key end

     0   :  { %s1617_s0 = inlined_call_operand.vmem [shape: s32[4,1], index: 0, kind: input, shape index: {}]   ;;  %s1618_s1 = inlined_call_operand.vmem [shape: f32[4,32], index: 1, kind: input, shape index: {}]   ;;  %s1619_s2 = inlined_call_operand.vmem [shape: f32[4,32], index: 2, kind: input, shape index: {}]   ;;  %s1620_s3 = inlined_call_operand.vmem [shape: f32[4,8,32], index: 3, kind: input, shape index: {}]   ;;  %s1621_s4 = inlined_call_operand.vmem [shape: f32[4,8,32], index: 4, kind: input, shape index: {}]   ;;  %s1622_s5 = inlined_call_operand.vmem [shape: s32[4,8], index: 5, kind: input, shape index: {}]   ;;  %s1623_s6 = inlined_call_operand.vmem [shape: f32[50,16], index: 6, kind: input, shape index: {}]   ;;  %s1624_s7 = inlined_call_operand.vmem [shape: f32[32,32], index: 7, kind: input, shape index: {}]   ;;  %s1625_s8 = inlined_call_operand.vmem [shape: f32[1,32], index: 8, kind: input, shape index: {}]   ;;  %s1626_s9 = inlined_call_operand.vmem [shape: f32[1,1,32], index: 9, kind: input, shape index: {}]   ;;  %s1627_s10 = inlined_call_operand.vmem [shape: f32[80,128], index: 10, kind: input, shape index: {}]   ;;  %s1628_s11 = inlined_call_operand.vmem [shape: f32[1,128], index: 11, kind: input, shape index: {}]   ;;  %s1629_s12 = inlined_call_operand.vmem [shape: f32[80,50], index: 12, kind: input, shape index: {}]   ;;  %s1630_s13 = inlined_call_operand.vmem [shape: f32[1,50], index: 13, kind: input, shape index: {}]   ;;  %s1631_s14 = inlined_call_operand.hbm [shape: f32[4,50], index: 14, kind: output, shape index: {0}]   ;;  %s1632_s15 = inlined_call_operand.hbm [shape: f32[4,32], index: 15, kind: output, shape index: {1}]   ;;  %s1633_s16 = inlined_call_operand.hbm [shape: f32[4,8], index: 16, kind: output, shape index: {2}]  }
   0x1   :  { %1634 = sst [smem:[#allocation9_spill]] %s1617_s0 }
   0x2   :  { %22 = vsyncpa [#allocation3], 0  ;;  %v147_v0 = vld [vmem:[%s1624_s7] sm:$0xff]  ;;  %v148_v1 = vld [vmem:[%s1624_s7 + $0x8] sm:$0xff]  ;;  %v1262_v3 = vmov 0.0|0.0   ;;  %vm1263_vm0 = vmmov 0  }
   0x3   :  { %v149_v2 = vld [vmem:[%s1624_s7 + $0x10] sm:$0xff]  ;;  %1123 = vmatprep.subr.bf16.mxu1 %v1262_v3  ;;  %v1124_v4 = vpack.c.bf16 %v148_v1, %v147_v0  ;;  %v150_v5 = vld [vmem:[%s1624_s7 + $0x18] sm:$0xff]  ;;  %v1264_v6 = vmov 0.0   ;;  %1114 = vmatprep.subr.bf16.mxu0 %v1262_v3 }
   0x4   :  { %1045 = vmatprep.mubr.msk.f32.mxu1 %vm1263_vm0, %v1264_v6  ;;  %1034 = vmatprep.mubr.msk.f32.mxu0 %vm1263_vm0, %v1264_v6 }
   0x5   :  { %23 = vsyncpa [#allocation5], 0  ;;  %1125 = vmatpush3.bf16.msra.mxu1 %v1124_v4  ;;  %v1127_v7 = vpack.c.bf16 %v150_v5, %v149_v2  ;;  %v1381_v8 = vld [vmem:[%s1618_s1] sm:$0xf]  ;;  %vm158_vm1 = vcmask 261120   ;;  %v52_v9 = vlaneseq  ;;  %v233_v27 = vld [vmem:[%s1621_s4 + $0x8] sm:$0xff] }
   0x6   :  { %1126 = vmatprep.subr.bf16.mxu1 %v1262_v3  ;;  %v1265_v10 = vmov 1966171168   ;;  %v965_v14 = vld [vmem:[%s1625_s8] ss:$0 sm:$0xff]  ;;  %v234_v28 = vld [vmem:[%s1621_s4 + $0x10] sm:$0xff]  ;;  %v235_v33 = vld [vmem:[%s1621_s4 + $0x18] sm:$0xff] }
   0x7   :  { %v238_v11 = vunpack.c.l.s4 %v1265_v10  ;;  %v241_v13 = vshrl.u32 %v52_v9, 7  ;;  %v232_v23 = vld [vmem:[%s1621_s4] sm:$0xff]  ;;  %v53_v51 = vand.u32 127, %v52_v9  ;;  %vm334_vm2 = vcmask 1041409   ;;  %s1269_s26 = smov 48   ;;  %s1270_s30 = smov 32  }
   0x8   :  { %v967_v38 = vld [vmem:[%s1626_s9] ss:$0 sm:$0xff]  ;;  %vm336_vm3 = vcmask 1042434   ;;  %vm338_vm4 = vcmask 1043459   ;;  %vm342_vm6 = vcmask 60416   ;;  %v1266_v5 = vmov 0  }
   0x9   :  { %1128 = vmatpush3.bf16.msra.mxu1 %v1127_v7  ;;  %v239_v12 = vunpack.c.0.s8 %v238_v11  ;;  %v263_v20 = vsub.s32 0, %v241_v13  ;;  %v320_v53 = vsub.s32 %v53_v51, %v241_v13  ;;  %v312_v58 = vld [vmem:[%s1622_s5] sm:$0xf]  ;;  %s1635_s5 = sld [smem:[#allocation9_spill]]  ;;  %1171 = vset.pattern.permute.xlu0 %v1266_v5  ;;  %vm72_vm8 = vcmask 1041408  }
   0xa   :  { %1048 = vmatprep.subr.mxu1 %v1264_v6  ;;  %vm313_vm5 = vcmp.eq.s32.totalorder %v312_v58, 0  ;;  %vm68_vm9 = vcmask 408576   ;;  %vm383_vm10 = vcmask 64512   ;;  %vm688_vm11 = vcmask 130048  }
   0xb   :  { %v1391_v15 = vsub.s32 %v239_v12, %v241_v13  ;;  %v61_v13 = vld [vmem:[%s1623_s6] sm:$0xff]  ;;  %vm690_vm12 = vcmask 392192   ;;  %vm709_vm13 = vcmask 654336   ;;  %vm918_vm14 = vcmask 257024  }
   0xc   :  { %1046 = vmatmul.mubr.msk.f32.vlgmr.msra.gmra.mrb[0].mxu1 %vm158_vm1, %v1381_v8  ;;  %vm824_vm15 = vcmask 523264  }
   0xd   :  { %1050 = vmatprep.mubr.msk.f32.mxu1 %vm1263_vm0, %v1264_v6 }
   0xf   :  { %v54_v4 = vld [vmem:[%s1635_s5] sm:$0xf] }
  0xdf   :  { %v228_v16 = vpop.f32.mrb[0].mxu1 }
  0xe0   :  { %v229_v17 = vadd.f32 %v965_v14, %v228_v16  ;;  %v1047_v18 = vpop.f32.mrb[1].mxu1  ;;  %v62_v14 = vld [vmem:[%s1623_s6 + $0x8] sm:$0xff] }
  0xe1   :  { %v1115_v16 = vpack.c.bf16 %v62_v14, %v61_v13  ;;  %v64_v18 = vld [vmem:[%s1623_s6 + $0x18] sm:$0xff] }
  0xe2   :  { %v243_v19 = vrot.slane %v229_v17, %v1391_v15  ;;  %v63_v17 = vld [vmem:[%s1623_s6 + $0x10] sm:$0xff] }
  0xe3   :  { %1116 = vmatpush3.bf16.msra.mxu0 %v1115_v16 }
  0xe4   :  { %v244_v21 = vcombine.high %v243_v19, %v243_v19  ;;  %v251_v22 = vrot.slane %v243_v19, %v1391_v15  ;;  %1117 = vmatprep.subr.bf16.mxu0 %v1262_v3  ;;  %v1118_v19 = vpack.c.bf16 %v64_v18, %v63_v17 }
  0xe6   :  { %v258_v24 = vrot.slane %v244_v21, %v1391_v15  ;;  %v259_v25 = vcombine.high %v251_v22, %v251_v22  ;;  %v264_v26 = vrot.slane %v251_v22, %v263_v20  ;;  %v66_v21 = vld [vmem:[%s1623_s6 + $0x28] sm:$0xff] }
  0xe7   :  { %1119 = vmatpush3.bf16.msra.mxu0 %v1118_v19 }
  0xe8   :  { %v260_v29 = vcombine.high %v258_v24, %v258_v24  ;;  %v268_v30 = vrot.slane %v258_v24, %v263_v20  ;;  %v272_v31 = vrot.slane %v259_v25, %v263_v20  ;;  %v281_v32 = vadd.f32 %v264_v26, %v232_v23  ;;  %1120 = vmatprep.subr.bf16.mxu0 %v1262_v3  ;;  %v379_v24 = vld [vmem:[%s1620_s3] sm:$0xff]  ;;  %v67_v25 = vld [vmem:[%s1623_s6 + $0x30] sm:$0x3] }
  0xe9   :  { %1049 = vmatpush3.msra.mxu1 %v379_v24 }
  0xea   :  { %v276_v34 = vrot.slane %v260_v29, %v263_v20  ;;  %v282_v35 = vadd.f32 %v268_v30, %v233_v27  ;;  %v283_v36 = vadd.f32 %v272_v31, %v234_v28  ;;  %1172 = vtanh.f32 %v281_v32  ;;  %v65_v20 = vld [vmem:[%s1623_s6 + $0x20] sm:$0xff]  ;;  %1053 = vmatprep.subr.mxu1 %v1264_v6  ;;  %v381_v27 = vld [vmem:[%s1620_s3 + $0x10] sm:$0xff] }
  0xeb   :  { %v1121_v22 = vpack.c.bf16 %v66_v21, %v65_v20 }
  0xec   :  { %v284_v37 = vadd.f32 %v276_v34, %v235_v33  ;;  %1174 = vtanh.f32 %v282_v35  ;;  %v380_v33 = vld [vmem:[%s1620_s3 + $0x8] sm:$0xff] }
  0xed   :  { %1176 = vtanh.f32 %v283_v36  ;;  %1122 = vmatpush3.bf16.msra.mxu0 %v1121_v22 }
  0xee   :  { %1178 = vtanh.f32 %v284_v37  ;;  %1032 = vmatprep.subr.mxu0 %v1264_v6  ;;  %v382_v37 = vld [vmem:[%s1620_s3 + $0x18] sm:$0xff]  ;;  %s1267_s3 = smov 64  }
  0xf1   :  { %1033 = vmatpush3.msk.msra.mxu0 %vm72_vm8, %v67_v25 }
  0xf2   :  { %1058 = vmatprep.subr.mxu0 %v1264_v6 }
  0xf4   :  { %v1173_v39 = vpop.eup %1172 }
  0xf5   :  { %v296_v40 = vmul.f32 %v1173_v39, %v967_v38 }
  0xf6   :  { %v1175_v41 = vpop.eup %1174 }
  0xf7   :  { %v1177_v42 = vpop.eup %1176  ;;  %v300_v43 = vsel %vm158_vm1, %v296_v40, 0.0  ;;  %v297_v44 = vmul.f32 %v1175_v41, %v967_v38  ;;  %v692_v40 = vld [vmem:[%s1627_s10] sm:$0xff]  ;;  %v693_v41 = vld [vmem:[%s1627_s10 + $0x8] sm:$0xff] }
  0xf8   :  { %v1179_v45 = vpop.eup %1178  ;;  %301 = vadd.xlane.f32.xlu0 %v300_v43  ;;  %v298_v46 = vmul.f32 %v1177_v42, %v967_v38  ;;  %v694_v42 = vld [vmem:[%s1627_s10 + $0x10] sm:$0xff]  ;;  %v1130_v43 = vpack.c.bf16 %v693_v41, %v692_v40  ;;  %v835_v40 = vld [vmem:[%s1629_s12 + $0x48] sm:$0xff] }
  0xf9   :  { %v299_v48 = vmul.f32 %v1179_v45, %v967_v38  ;;  %v303_v49 = vsel %vm158_vm1, %v297_v44, 0.0  ;;  %v696_v45 = vld [vmem:[%s1627_s10 + $0x20] sm:$0xff] }
  0xfa   :  { %v306_v47 = vsel %vm158_vm1, %v298_v46, 0.0  ;;  %v697_v46 = vld [vmem:[%s1627_s10 + $0x28] sm:$0xff] }
  0xfb   :  { %307 = vadd.xlane.f32.xlu1 %v306_v47  ;;  %v309_v50 = vsel %vm158_vm1, %v299_v48, 0.0  ;;  %v1136_v47 = vpack.c.bf16 %v697_v46, %v696_v45  ;;  %v698_v48 = vld [vmem:[%s1627_s10 + $0x30] sm:$0xff] }
  0xfc   :  { %304 = vadd.xlane.f32.xlu0 %v303_v49  ;;  %v699_v49 = vld [vmem:[%s1627_s10 + $0x38] sm:$0xff] }
  0xff   :  { %310 = vadd.xlane.f32.xlu1 %v309_v50  ;;  %v1139_v50 = vpack.c.bf16 %v699_v49, %v698_v48 }
 0x185   :  { %v302_v52 = vpop.xlane.xlu0 %301 }
 0x186   :  { %v321_v56 = vrot.slane %v302_v52, %v320_v53  ;;  %v701_v52 = vld [vmem:[%s1627_s10 + $0x48] sm:$0xff] }
 0x188   :  { %v308_v54 = vpop.xlane.xlu1 %307 }
 0x189   :  { %v305_v55 = vpop.xlane.xlu0 %304  ;;  %v329_v59 = vrot.slane %v308_v54, %v320_v53 }
 0x18a   :  { %v325_v57 = vrot.slane %v305_v55, %v320_v53 }
 0x18c   :  { %v335_v60 = vsel %vm334_vm2, %v325_v57, %v321_v56  ;;  %v311_v61 = vpop.xlane.xlu1 %310 }
 0x18d   :  { %v333_v62 = vrot.slane %v311_v61, %v320_v53  ;;  %v337_v63 = vsel %vm336_vm3, %v329_v59, %v335_v60 }
 0x18f   :  { %v339_v0 = vsel %vm338_vm4, %v333_v62, %v337_v63 }
 0x190   :  { %v341_v1 = vsel %vm313_vm5, -1e+10, %v339_v0 }
 0x191   :  { %v343_v2 = vsel %vm342_vm6, %v341_v1, -inf }
 0x192   :  { %344 = vmax.xlane.f32.xlu0 %v343_v2 }
 0x1a8   :  { %56 = vperm.xlu0 %1171, %v54_v4  }
 0x21f   :  { %v345_v7 = vpop.xlane.xlu0 %344 }
 0x220   :  { %v346_v9 = vsub.f32 %v341_v1, %v345_v7 }
 0x222   :  { %v347_v10 = vmul.f32 1.442695, %v346_v9 }
 0x224   :  { %1180 = vpow2.f32 %v347_v10 }
 0x227   :  { %v57_v23 = vpop.permute.xlu0 %56 }
 0x228   :  { %vm58_vm7 = vcmp.eq.s32.totalorder %v53_v51, %v57_v23  ;;  %v700_v51 = vld [vmem:[%s1627_s10 + $0x40] sm:$0xff] }
 0x229   :  { %v962_v26 = vsel %vm58_vm7, 1.0, %v1264_v6  ;;  %v1142_v53 = vpack.c.bf16 %v701_v52, %v700_v51 }
 0x22a   :  { %1035 = vmatmul.mubr.msk.f32.vlgmr.msra.gmra.mrb[0].mxu0 %vm68_vm9, %v962_v26 }
 0x22b   :  { %1060 = vmatprep.mubr.msk.f32.mxu0 %vm1263_vm0, %v1264_v6  ;;  %1059 = vmatpush3.msra.mxu0 %v381_v27  ;;  %v826_v27 = vld [vmem:[%s1629_s12] sm:$0xff] }
 0x22c   :  { %1129 = vmatprep.subr.bf16.mxu0 %v1262_v3 }
 0x22e   :  { %v1181_v11 = vpop.eup %1180 }
 0x22f   :  { %v349_v12 = vsel %vm342_vm6, %v1181_v11, 0.0 }
 0x230   :  { %350 = vadd.xlane.f32.xlu1 %v349_v12 }
 0x2bd   :  { %v351_v28 = vpop.xlane.xlu1 %350 }
 0x2be   :  { %1182 = vrcp.f32 %v351_v28  ;;  %v827_v28 = vld [vmem:[%s1629_s12 + $0x8] sm:$0xff] }
 0x2c8   :  { %v1183_v29 = vpop.eup %1182 }
 0x2c9   :  { %v353_v30 = vmul.f32 %v1183_v29, %v1181_v11  ;;  %v972_v11 = vld [vmem:[%s1628_s11] ss:$0 sm:$0xff]  ;;  %v828_v29 = vld [vmem:[%s1629_s12 + $0x10] sm:$0xff] }
 0x2cb   :  { %v361_v31 = vrot.slane %v353_v30, %v1391_v15  ;;  %920 = vst.msk [vmem:[#allocation6] sm:$0xf] %vm342_vm6, %v353_v30  ;;  %v1145_v30 = vpack.c.bf16 %v827_v28, %v826_v27 }
 0x2cd   :  { %v369_v32 = vrot.slane %v361_v31, %v1391_v15  ;;  %v362_v34 = vcombine.high %v361_v31, %v361_v31  ;;  %v829_v31 = vld [vmem:[%s1629_s12 + $0x18] sm:$0xff] }
 0x2cf   :  { %1051 = vmatmul.mubr.msk.f32.vlgmr.msra.gmra.mrb[2].mxu1 %vm383_vm10, %v369_v32  ;;  %v377_v35 = vcombine.high %v369_v32, %v369_v32  ;;  %v376_v36 = vrot.slane %v362_v34, %v1391_v15  ;;  %v1148_v32 = vpack.c.bf16 %v829_v31, %v828_v29  ;;  %v831_v34 = vld [vmem:[%s1629_s12 + $0x28] sm:$0xff] }
 0x2d0   :  { %1054 = vmatpush3.msra.mxu1 %v380_v33  ;;  %1055 = vmatprep.mubr.msk.f32.mxu1 %vm1263_vm0, %v1264_v6  ;;  %v830_v33 = vld [vmem:[%s1629_s12 + $0x20] sm:$0xff] }
 0x2d1   :  { %1061 = vmatmul.mubr.msk.f32.vlgmr.msra.gmra.mrb[2].mxu0 %vm383_vm10, %v377_v35  ;;  %1063 = vmatprep.subr.mxu1 %v1264_v6  ;;  %v378_v38 = vcombine.high %v376_v36, %v376_v36 }
 0x2d2   :  { %1088 = vmatprep.mubr.msk.f32.mxu0 %vm1263_vm0, %v1264_v6  ;;  %1131 = vmatpush3.bf16.msra.mxu0 %v1130_v43 }
 0x2d3   :  { %1056 = vmatmul.mubr.msk.f32.vlgmr.msra.gmra.mrb[4].mxu1 %vm383_vm10, %v376_v36  ;;  %1132 = vmatprep.subr.bf16.mxu0 %v1262_v3  ;;  %v1151_v36 = vpack.c.bf16 %v831_v34, %v830_v33 }
 0x2d4   :  { %1064 = vmatpush3.msra.mxu1 %v382_v37  ;;  %1065 = vmatprep.mubr.msk.f32.mxu1 %vm1263_vm0, %v1264_v6  ;;  %v832_v37 = vld [vmem:[%s1629_s12 + $0x30] sm:$0xff] }
 0x2d5   :  { %1144 = vmatprep.subr.bf16.mxu1 %v1262_v3 }
 0x2d7   :  { %1066 = vmatmul.mubr.msk.f32.vlgmr.msra.gmra.mrb[6].mxu1 %vm383_vm10, %v378_v38  ;;  %v833_v38 = vld [vmem:[%s1629_s12 + $0x38] sm:$0xff] }
 0x2d8   :  { %1111 = vmatprep.mubr.msk.f32.mxu1 %vm1263_vm0, %v1264_v6  ;;  %v695_v6 = vld [vmem:[%s1627_s10 + $0x18] sm:$0xff]  ;;  %s1268_s10 = smov 16   ;;  %1146 = vmatpush3.bf16.msra.mxu1 %v1145_v30 }
 0x2d9   :  { %v1133_v44 = vpack.c.bf16 %v695_v6, %v694_v42  ;;  %1147 = vmatprep.subr.bf16.mxu1 %v1262_v3 }
 0x2db   :  { %1134 = vmatpush3.bf16.msra.mxu0 %v1133_v44 }
 0x2dc   :  { %1135 = vmatprep.subr.bf16.mxu0 %v1262_v3  ;;  %1149 = vmatpush3.bf16.msra.mxu1 %v1148_v32 }
 0x2dd   :  { %1150 = vmatprep.subr.bf16.mxu1 %v1262_v3 }
 0x2df   :  { %1137 = vmatpush3.bf16.msra.mxu0 %v1136_v47 }
 0x2e0   :  { %1138 = vmatprep.subr.bf16.mxu0 %v1262_v3  ;;  %1152 = vmatpush3.bf16.msra.mxu1 %v1151_v36 }
 0x2e1   :  { %1153 = vmatprep.subr.bf16.mxu1 %v1262_v3 }
 0x2e3   :  { %1140 = vmatpush3.bf16.msra.mxu0 %v1139_v50 }
 0x2e4   :  { %1141 = vmatprep.subr.bf16.mxu0 %v1262_v3 }
 0x2e7   :  { %1143 = vmatpush3.bf16.msra.mxu0 %v1142_v53 }
 0x2fd   :  { %v142_v15 = vpop.f32.mrb[0].mxu0 }
 0x2fe   :  { %v1036_v39 = vpop.f32.mrb[1].mxu0  ;;  %820 = vrot.lane.b32.xlu0 %v142_v15, %s1267_s3 }
 0x2ff   :  { %v834_v39 = vld [vmem:[%s1629_s12 + $0x40] sm:$0xff]  ;;  %s1271_s12 = smov [#allocation4]  }
 0x300   :  { %v1157_v41 = vpack.c.bf16 %v835_v40, %v834_v39 }
 0x370   :  { %v821_v44 = vpop.permute.xlu0 %820 }
 0x3a2   :  { %v452_v54 = vpop.f32.mrb[2].mxu1 }
 0x3a3   :  { %v1052_v55 = vpop.f32.mrb[3].mxu1 }
 0x3a4   :  { %v596_v56 = vpop.f32.mrb[2].mxu0 }
 0x3a5   :  { %v1062_v57 = vpop.f32.mrb[3].mxu0  ;;  %v678_v61 = vrot.slane %v596_v56, 6 }
 0x3a6   :  { %v524_v58 = vpop.f32.mrb[4].mxu1 }
 0x3a7   :  { %v676_v59 = vrot.slane %v524_v58, 7  ;;  %v1057_v60 = vpop.f32.mrb[5].mxu1 }
 0x3a9   :  { %v677_v62 = vsel %vm334_vm2, %v676_v59, %v452_v54 }
 0x3aa   :  { %v668_v63 = vpop.f32.mrb[6].mxu1  ;;  %v679_v0 = vsel %vm336_vm3, %v678_v61, %v677_v62 }
 0x3ab   :  { %v680_v1 = vrot.slane %v668_v63, 5  ;;  %v1067_v2 = vpop.f32.mrb[7].mxu1 }
 0x3ad   :  { %v1524_v4 = vsel %vm338_vm4, %v680_v1, %v679_v0 }
 0x3ae   :  { %682 = vrot.lane.b32.xlu1 %v1524_v4, %s1268_s10 }
 0x3b2   :  { %685 = vrot.lane.b32.xlu1 %v1381_v8, %s1269_s26  ;;  %v790_v8 = vld [vmem:[%s1619_s2] sm:$0xf]  ;;  %s937_s26 = sshll.u32 %s1271_s12, 4  ;;  %s938_s26 = int_to_ptr.vmem [resolvable:$true] %s937_s26 }
 0x3b3   :  { %s1192_s5 = scalar_lea.vmem %s938_s26, 64  ;;  %p1197_p1 = scmp.lt.s32.totalorder %s938_s26, %s938_s26 }
 0x3b4   :  { %p1193_p0 = scmp.ne.s32.totalorder %s938_s26, %s1192_s5  ;;  %p1198_p2 = scmp.lt.s32.totalorder %s1192_s5, %s1192_s5 }
 0x3b6   :  { %p1199_p3 = por %p1198_p2, %p1197_p1 }
 0x3b8   :  { %p1200_p4 = pnand %p1199_p3, %p1193_p0 }
 0x420   :  { %v683_v5 = vpop.permute.xlu1 %682 }
 0x421   :  { %v689_v7 = vsel %vm688_vm11, %v142_v15, %v683_v5  ;;  %v1154_v15 = vpack.c.bf16 %v833_v38, %v832_v37 }
 0x423   :  { %1155 = vmatpush3.bf16.msra.mxu1 %v1154_v15 }
 0x424   :  { %v686_v9 = vpop.permute.xlu1 %685  ;;  %1156 = vmatprep.subr.bf16.mxu1 %v1262_v3 }
 0x425   :  { %v691_v10 = vsel %vm690_vm12, %v689_v7, %v686_v9 }
 0x426   :  { %1089 = vmatmul.mubr.msk.f32.vlgmr.msra.gmra.mrb[4].mxu0 %vm709_vm13, %v691_v10 }
 0x427   :  { %1158 = vmatpush3.bf16.msra.mxu1 %v1157_v41 }
 0x4f9   :  { %v779_v12 = vpop.f32.mrb[4].mxu0 }
 0x4fa   :  { %v780_v13 = vadd.f32 %v972_v11, %v779_v12  ;;  %v1090_v14 = vpop.f32.mrb[5].mxu0 }
 0x4fc   :  { %1184 = vtanh.f32 %v780_v13  ;;  %v974_v17 = vmul.f32 -1.442695, %v780_v13 }
 0x4fe   :  { %1186 = vpow2.f32 %v974_v17 }
 0x506   :  { %v1185_v16 = vpop.eup %1184 }
 0x507   :  { %797 = vrot.lane.b32.xlu1 %v1185_v16, %s1267_s3 }
 0x508   :  { %v1187_v18 = vpop.eup %1186 }
 0x509   :  { %v786_v19 = vadd.f32 1.0, %v1187_v18 }
 0x50b   :  { %792 = vrot.lane.b32.xlu1 %v790_v8, %s1270_s30  ;;  %1188 = vrcp.f32 %v786_v19 }
 0x515   :  { %v1189_v20 = vpop.eup %1188 }
 0x579   :  { %v798_v21 = vpop.permute.xlu1 %797 }
 0x57a   :  { %v800_v22 = vmul.f32 %v1189_v20, %v798_v21 }
 0x57c   :  { %802 = vrot.lane.b32.xlu1 %v800_v22, %s1270_s30 }
 0x57d   :  { %v793_v23 = vpop.permute.xlu1 %792 }
 0x57e   :  { %v795_v24 = vmul.f32 %v1189_v20, %v793_v23 }
 0x5ee   :  { %v803_v25 = vpop.permute.xlu1 %802 }
 0x5ef   :  { %v805_v26 = vadd.f32 %v803_v25, %v795_v24 }
 0x5f1   :  { %1190 = vtanh.f32 %v805_v26 }
 0x5fb   :  { %v1191_v35 = vpop.eup %1190 }
 0x5fc   :  { %808 = vrot.lane.b32.xlu1 %v1191_v35, %s1267_s3 }
 0x66e   :  { %v809_v42 = vpop.permute.xlu1 %808 }
 0x66f   :  { %v811_v43 = vmul.f32 %v1189_v20, %v809_v42 }
 0x671   :  { %813 = vrot.lane.b32.xlu1 %v811_v43, %s1270_s30 }
 0x675   :  { %816 = vrot.lane.b32.xlu1 %v1524_v4, %s1270_s30 }
 0x6e3   :  { %v814_v6 = vpop.permute.xlu1 %813 }
 0x6e4   :  { %919 = vst.msk [vmem:[#allocation4] sm:$0xf] %vm918_vm14, %v814_v6 }
 0x6e7   :  { %v817_v3 = vpop.permute.xlu1 %816 }
 0x6e8   :  { %v823_v45 = vsel %vm158_vm1, %v814_v6, %v817_v3 }
 0x6e9   :  { %v825_v46 = vsel %vm824_vm15, %v823_v45, %v821_v44 }
 0x6ea   :  { %1112 = vmatmul.mubr.msk.f32.vlgmr.msra.gmra.mrb[8].mxu1 %vm709_vm13, %v825_v46 }
 0x6eb   :  { %1203 = shalt.err (!%p1200_p4)
}
 0x6ec   :  { %s1204_s29 = scalar_lea.hbm %s1632_s15, 64 }
 0x6ed   :  { %p1205_p5 = scmp.ne.s32.totalorder %s1632_s15, %s1204_s29  ;;  %p1208_p6 = scmp.lt.u32.totalorder %s1204_s29, %s1632_s15 }
 0x6ef   :  { %p1210_p7 = pnand %p1208_p6, %p1205_p5 }
 0x6f1   :  { %1213 = shalt.err (!%p1210_p7)
}
 0x6f2   :  { %940 = dma.vmem_to_hbm [thread:$0]  %s938_s26, 64, %s1632_s15, [#allocation5]  }
 0x6f3   :  { %s1272_s17 = smov [#allocation6]  }
 0x6f4   :  { %s947_s8 = sshll.u32 %s1272_s17, 4  ;;  %s948_s8 = int_to_ptr.vmem [resolvable:$true] %s947_s8 }
 0x6f5   :  { %s1214_s18 = scalar_lea.vmem %s948_s8, 64  ;;  %p1219_p9 = scmp.lt.s32.totalorder %s948_s8, %s948_s8 }
 0x6f6   :  { %p1215_p8 = scmp.ne.s32.totalorder %s948_s8, %s1214_s18  ;;  %p1220_p10 = scmp.lt.s32.totalorder %s1214_s18, %s1214_s18 }
 0x6f8   :  { %p1221_p11 = por %p1220_p10, %p1219_p9 }
 0x6fa   :  { %p1222_p12 = pnand %p1221_p11, %p1215_p8 }
 0x6fc   :  { %1225 = shalt.err (!%p1222_p12)
}
 0x6fd   :  { %s1226_s21 = scalar_lea.hbm %s1633_s16, 64 }
 0x6fe   :  { %p1227_p13 = scmp.ne.s32.totalorder %s1633_s16, %s1226_s21  ;;  %p1230_p0 = scmp.lt.u32.totalorder %s1226_s21, %s1633_s16 }
 0x700   :  { %p1232_p1 = pnand %p1230_p0, %p1227_p13 }
 0x702   :  { %1235 = shalt.err (!%p1232_p1)
}
 0x703   :  { %950 = dma.vmem_to_hbm [thread:$0]  %s948_s8, 64, %s1633_s16, [#allocation5]   ;;  %v975_v47 = vld [vmem:[%s1630_s13] ss:$0 sm:$0xff]  ;;  %vm916_vm0 = vcmask 404480  }
 0x704   :  { %s1273_s25 = smov [#allocation2]  }
 0x705   :  { %s927_s10 = sshll.u32 %s1273_s25, 4  ;;  %s928_s10 = int_to_ptr.vmem [resolvable:$true] %s927_s10 }
 0x706   :  { %s1236_s12 = scalar_lea.vmem %s928_s10, 64  ;;  %p1241_p3 = scmp.lt.s32.totalorder %s928_s10, %s928_s10 }
 0x707   :  { %p1237_p2 = scmp.ne.s32.totalorder %s928_s10, %s1236_s12  ;;  %p1242_p4 = scmp.lt.s32.totalorder %s1236_s12, %s1236_s12 }
 0x709   :  { %p1243_p5 = por %p1242_p4, %p1241_p3 }
 0x70b   :  { %p1244_p6 = pnand %p1243_p5, %p1237_p2 }
 0x7bd   :  { %v912_v48 = vpop.f32.mrb[8].mxu1 }
 0x7be   :  { %v913_v49 = vadd.f32 %v975_v47, %v912_v48  ;;  %v1113_v50 = vpop.f32.mrb[9].mxu1 }
 0x7c0   :  { %917 = vst.msk [vmem:[#allocation2] sm:$0xf] %vm916_vm0, %v913_v49 }
 0x7c1   :  { %1247 = shalt.err (!%p1244_p6)
}
 0x7c2   :  { %s1248_s5 = scalar_lea.hbm %s1631_s14, 64 }
 0x7c3   :  { %p1249_p7 = scmp.ne.s32.totalorder %s1631_s14, %s1248_s5  ;;  %p1252_p8 = scmp.lt.u32.totalorder %s1248_s5, %s1631_s14 }
 0x7c5   :  { %p1254_p9 = pnand %p1252_p8, %p1249_p7 }
 0x7c7   :  { %1257 = shalt.err (!%p1254_p9)
}
 0x7c8   :  { %930 = dma.vmem_to_hbm [thread:$0]  %s928_s10, 64, %s1631_s14, [#allocation3]  }
 0x7c9   :  { %1258 = dma.done.wait [#allocation3], 64  }
 0x7ca   :  { %1259 = vsyncadd [#allocation3], 4294967232 }
 0x7cb   :  { %1260 = dma.done.wait [#allocation5], 128  }
 0x7cc   :  { %1261 = vsyncadd [#allocation5], 4294967168 }
 0x7cd   :  { %960 = vsyncpa [#allocation3], 1 }
 0x7ce   :  { %961 = vsyncpa [#allocation5], 1 }

</bundles_post_ra>
